<compile_context>
chip_gen: v6e
topology: v6e:2x2x1
jax: 0.10.0
libtpu: 0.0.40
codegen_flags: <defaults>
</compile_context>

<pallas_src>
import jax
import jax.numpy as jnp
from jax.experimental import pallas as pl
from jax.experimental.pallas import tpu as pltpu

# ---- small, module-consistent dimensions -------------------------------------
N  = 256   # protein batch (multiple of the 128-row tile)
D  = 256   # input_dim            (orig 1280)
H4 = 128   # fc4 out_features     (orig 256); fc4 in_features = D so the
           # forward-as-written (fc4 applied to `data`) is runnable
C  = 17    # output_dim           (orig 17)
CP = 128   # lane-padded output width (one full lane group)
TM = 128   # batch tile (rows per grid step)


def _leaky_relu(v):
    # nn.LeakyReLU() default negative_slope = 0.01
    return jnp.where(v > 0, v, 0.01 * v)


def goclass_kernel(x_ref, w4_ref, b4_ref, wo_ref, bo_ref, out_ref):
    """Fused live path: fc4 -> LeakyReLU -> (dropout=id) -> out -> sigmoid."""
    x = x_ref[...]                                              # (TM, D) bf16

    # fc4(data) + bias; f32 accumulation on the MXU
    h4 = jnp.dot(x, w4_ref[...], preferred_element_type=jnp.float32) + b4_ref[...]
    h4 = _leaky_relu(h4)                                        # VPU
    # dropout == identity (eval semantics)

    # out projection (lane-padded to CP=128 -> unmasked, lane-dense stores)
    logits = jnp.dot(h4.astype(jnp.bfloat16), wo_ref[...],
                     preferred_element_type=jnp.float32) + bo_ref[...]
    out_ref[...] = jax.nn.sigmoid(logits)                       # EUP, (TM, CP) f32


@jax.jit
def goclass_forward(x, w4, b4, wo, bo):
    """x: (N, D) f32; w4: (D, H4); b4: (1, H4); wo: (H4, C); bo: (1, C)."""
    n_rows = x.shape[0]

    # Pad the batch up to a multiple of the row tile (cheap, usually a no-op).
    n_pad = (-n_rows) % TM
    if n_pad:
        x = jnp.concatenate([x, jnp.zeros((n_pad, D), x.dtype)], axis=0)
    n_padded = n_rows + n_pad

    # bf16 inputs for the MXU / halved DMA bytes; biases stay f32 (post-acc add)
    x_bf  = x.astype(jnp.bfloat16)
    w4_bf = w4.astype(jnp.bfloat16)

    # Lane-pad the output projection so the kernel writes a dense 128-wide slab.
    wo_p = jnp.zeros((H4, CP), jnp.float32).at[:, :C].set(wo).astype(jnp.bfloat16)
    bo_p = jnp.zeros((1, CP), jnp.float32).at[:, :C].set(bo)

    out_padded = pl.pallas_call(
        goclass_kernel,
        out_shape=jax.ShapeDtypeStruct((n_padded, CP), jnp.float32),
        grid=(n_padded // TM,),
        in_specs=[
            pl.BlockSpec((TM, D), lambda i: (i, 0)),    # x tile (per grid step)
            pl.BlockSpec((D, H4), lambda i: (0, 0)),    # fc4 weight (resident)
            pl.BlockSpec((1, H4), lambda i: (0, 0)),    # fc4 bias
            pl.BlockSpec((H4, CP), lambda i: (0, 0)),   # out weight (lane-padded)
            pl.BlockSpec((1, CP), lambda i: (0, 0)),    # out bias  (lane-padded)
        ],
        out_specs=pl.BlockSpec((TM, CP), lambda i: (i, 0)),
        compiler_params=pltpu.CompilerParams(
            dimension_semantics=("parallel",)),          # both TCs on v7x
    )(x_bf, w4_bf, b4, wo_p, bo_p)

    return out_padded[:n_rows, :C]


def init_linear(key, fan_in, fan_out):
    """Deterministic init mimicking PyTorch nn.Linear default U(-1/sqrt(in), 1/sqrt(in))."""
    kw, kb = jax.random.split(key)
    bound = 1.0 / jnp.sqrt(jnp.float32(fan_in))
    w = jax.random.uniform(kw, (fan_in, fan_out), jnp.float32, -bound, bound)
    b = jax.random.uniform(kb, (1, fan_out), jnp.float32, -bound, bound)
    return w, b


def reference(x, w4, b4, wo, bo):
    """Pure-JAX reference of the same (bug-faithful, bf16-in / f32-acc) forward."""
    xb = x.astype(jnp.bfloat16)
    h4 = jnp.dot(xb, w4.astype(jnp.bfloat16),
                 preferred_element_type=jnp.float32) + b4
    h4 = _leaky_relu(h4)
    logits = jnp.dot(h4.astype(jnp.bfloat16), wo.astype(jnp.bfloat16),
                     preferred_element_type=jnp.float32) + bo
    return jax.nn.sigmoid(logits)


if __name__ == "__main__":
    root = jax.random.PRNGKey(0)
    kx, k4, ko = jax.random.split(root, 3)

    x = jax.random.normal(kx, (N, D), jnp.float32)

    # Only the live layers (fc4, out) are materialized; fc1/fc2/fc3 outputs are
    # dead in the original forward (x is reassigned from `data`), so their
    # parameters are intentionally not created, DMA'd, or multiplied.
    w4, b4 = init_linear(k4, D, H4)     # fc4 (in_features = D so forward runs)
    wo, bo = init_linear(ko, H4, C)     # out

    out = goclass_forward(x, w4, b4, wo, bo)
    out = jax.block_until_ready(out)

    ref = reference(x, w4, b4, wo, bo)
    assert out.shape == (N, C), f"bad shape {out.shape}"
    assert jnp.all(jnp.isfinite(out)), "non-finite output"
    assert jnp.allclose(out, ref, atol=1e-3, rtol=1e-3), "mismatch vs reference"

    print("KERNEL_OK")
</pallas_src>

<mosaic_0001>
module attributes {stable_mosaic.version = 11 : i64} {
  func.func @goclass_kernel(%arg0: i32, %arg1: memref<128x256xbf16, #tpu.memory_space<vmem>>, %arg2: memref<256x128xbf16, #tpu.memory_space<vmem>>, %arg3: memref<1x128xf32, #tpu.memory_space<vmem>>, %arg4: memref<128x128xbf16, #tpu.memory_space<vmem>>, %arg5: memref<1x128xf32, #tpu.memory_space<vmem>>, %arg6: memref<128x128xf32, #tpu.memory_space<vmem>>) attributes {dimension_semantics = [#tpu.dimension_semantics<parallel>], iteration_bounds = array<i64: 2>, scalar_prefetch = 0 : i64, scratch_operands = 0 : i64, tpu.core_type = #tpu.core_type<tc>, window_params = [{transform_indices = @transform_0, window_bounds = array<i64: 128, 256>}, {pipeline_mode = #tpu.pipeline_mode<synchronous>, transform_indices = @transform_1, window_bounds = array<i64: 256, 128>}, {pipeline_mode = #tpu.pipeline_mode<synchronous>, transform_indices = @transform_2, window_bounds = array<i64: 1, 128>}, {pipeline_mode = #tpu.pipeline_mode<synchronous>, transform_indices = @transform_3, window_bounds = array<i64: 128, 128>}, {pipeline_mode = #tpu.pipeline_mode<synchronous>, transform_indices = @transform_4, window_bounds = array<i64: 1, 128>}, {transform_indices = @transform_5, window_bounds = array<i64: 128, 128>}]} {
    %c0 = arith.constant 0 : index
    %c0_0 = arith.constant 0 : index
    %0 = vector.load %arg1[%c0, %c0_0] : memref<128x256xbf16, #tpu.memory_space<vmem>>, vector<128x256xbf16>
    %c0_1 = arith.constant 0 : index
    %c0_2 = arith.constant 0 : index
    %1 = vector.load %arg2[%c0_1, %c0_2] : memref<256x128xbf16, #tpu.memory_space<vmem>>, vector<256x128xbf16>
    %cst = arith.constant dense<0.000000e+00> : vector<128x128xf32>
    %2 = tpu.matmul %0, %1, %cst {dimension_numbers = #tpu.dot_dimension_numbers<[1], [0], [0], [1], [0, 0, 1, 1], [], []>} : vector<128x256xbf16>, vector<256x128xbf16>, vector<128x128xf32> -> vector<128x128xf32>
    %c0_3 = arith.constant 0 : index
    %c0_4 = arith.constant 0 : index
    %3 = vector.load %arg3[%c0_3, %c0_4] : memref<1x128xf32, #tpu.memory_space<vmem>>, vector<1x128xf32>
    %4 = vector.broadcast %3 : vector<1x128xf32> to vector<128x128xf32>
    %5 = arith.addf %2, %4 : vector<128x128xf32>
    %cst_5 = arith.constant 0.000000e+00 : f32
    %6 = vector.broadcast %cst_5 : f32 to vector<128x128xf32>
    %7 = arith.cmpf ogt, %5, %6 : vector<128x128xf32>
    %cst_6 = arith.constant 0.00999999977 : f32
    %8 = vector.broadcast %cst_6 : f32 to vector<128x128xf32>
    %9 = arith.mulf %8, %5 : vector<128x128xf32>
    %10 = arith.select %7, %5, %9 : vector<128x128xi1>, vector<128x128xf32>
    %11 = arith.truncf %10 : vector<128x128xf32> to vector<128x128xbf16>
    %c0_7 = arith.constant 0 : index
    %c0_8 = arith.constant 0 : index
    %12 = vector.load %arg4[%c0_7, %c0_8] : memref<128x128xbf16, #tpu.memory_space<vmem>>, vector<128x128xbf16>
    %cst_9 = arith.constant dense<0.000000e+00> : vector<128x128xf32>
    %13 = tpu.matmul %11, %12, %cst_9 {dimension_numbers = #tpu.dot_dimension_numbers<[1], [0], [0], [1], [0, 0, 1, 1], [], []>} : vector<128x128xbf16>, vector<128x128xbf16>, vector<128x128xf32> -> vector<128x128xf32>
    %c0_10 = arith.constant 0 : index
    %c0_11 = arith.constant 0 : index
    %14 = vector.load %arg5[%c0_10, %c0_11] : memref<1x128xf32, #tpu.memory_space<vmem>>, vector<1x128xf32>
    %15 = vector.broadcast %14 : vector<1x128xf32> to vector<128x128xf32>
    %16 = arith.addf %13, %15 : vector<128x128xf32>
    %17 = arith.negf %16 : vector<128x128xf32>
    %18 = math.exp %17 : vector<128x128xf32>
    %cst_12 = arith.constant 1.000000e+00 : f32
    %19 = vector.broadcast %cst_12 : f32 to vector<128x128xf32>
    %20 = arith.addf %19, %18 : vector<128x128xf32>
    %21 = arith.divf %19, %20 : vector<128x128xf32>
    %c0_13 = arith.constant 0 : index
    %c0_14 = arith.constant 0 : index
    %22 = vector.load %arg6[%c0_13, %c0_14] : memref<128x128xf32, #tpu.memory_space<vmem>>, vector<128x128xf32>
    tpu.vector_store %arg6[%c0_13, %c0_14], %21 {strides = array<i32>} : memref<128x128xf32, #tpu.memory_space<vmem>>, vector<128x128xf32>,
    return
  }
  func.func @transform_0(%arg0: i32) -> (i32, i32) {
    %c0_i32 = arith.constant 0 : i32
    %c0_i32_0 = arith.constant 0 : i32
    return %arg0, %c0_i32 : i32, i32
  }
  func.func @transform_1(%arg0: i32) -> (i32, i32) {
    %c0_i32 = arith.constant 0 : i32
    %c0_i32_0 = arith.constant 0 : i32
    %c0_i32_1 = arith.constant 0 : i32
    return %c0_i32, %c0_i32_0 : i32, i32
  }
  func.func @transform_2(%arg0: i32) -> (i32, i32) {
    %c0_i32 = arith.constant 0 : i32
    %c0_i32_0 = arith.constant 0 : i32
    %c0_i32_1 = arith.constant 0 : i32
    return %c0_i32, %c0_i32_0 : i32, i32
  }
  func.func @transform_3(%arg0: i32) -> (i32, i32) {
    %c0_i32 = arith.constant 0 : i32
    %c0_i32_0 = arith.constant 0 : i32
    %c0_i32_1 = arith.constant 0 : i32
    return %c0_i32, %c0_i32_0 : i32, i32
  }
  func.func @transform_4(%arg0: i32) -> (i32, i32) {
    %c0_i32 = arith.constant 0 : i32
    %c0_i32_0 = arith.constant 0 : i32
    %c0_i32_1 = arith.constant 0 : i32
    return %c0_i32, %c0_i32_0 : i32, i32
  }
  func.func @transform_5(%arg0: i32) -> (i32, i32) {
    %c0_i32 = arith.constant 0 : i32
    %c0_i32_0 = arith.constant 0 : i32
    return %arg0, %c0_i32 : i32, i32
  }
}

</mosaic_0001>

<bundles_post_ra>
// kernel: goclass_forward.1
= control target key start
LH: loop header
LB: loop body
LE: loop exit
PB: predicated region body
PF: predicated region fallthrough
CT: control target
= control target key end

     0   :  { %s1293_s18 = smov 0   ;;  %s1467_s0 = inlined_call_operand.vmem [shape: bf16[256,256], index: 0, kind: input, shape index: {}]   ;;  %s1468_s1 = inlined_call_operand.vmem [shape: bf16[256,128], index: 1, kind: input, shape index: {}]   ;;  %s1469_s2 = inlined_call_operand.vmem [shape: f32[1,128], index: 2, kind: input, shape index: {}]   ;;  %s1470_s3 = inlined_call_operand.vmem [shape: bf16[128,128], index: 3, kind: input, shape index: {}]   ;;  %s1471_s4 = inlined_call_operand.vmem [shape: f32[1,128], index: 4, kind: input, shape index: {}]   ;;  %s1472_s5 = inlined_call_operand.vmem [shape: f32[256,128], index: 5, kind: output, shape index: {}]  }
   0x1 LB: > { %s952_s19 = sadd.s32 4294967295, %s1261_s18   ;;  %p956_p0 = scmp.ge.s32.totalorder %s1261_s18, 1  ;;  %s1261_s18 = sphi %s1293_s18, %s15_s18  }
   0x2   : > { %p189_p1 = scmp.lt.s32.totalorder %s1261_s18, 3 }
   0x4   : > { %p190_p2 = pnand %p956_p0, %p189_p1 }
   0x5   : > { %s957_s22 = sshll.u32 (!%p190_p2), %s952_s19, 4 }
   0x6   : > { %193 = sbr.rel (%p190_p2) target bundleno = 543 (0x21f), region = 40  ;;  %p219_p3 = scmp.lt.s32.totalorder (!%p190_p2), %s957_s22, 31 }
   0xb   : > { %v1143_v0 = vld [vmem:[%s1468_s1 + $0x78] sm:$0xff]   ;;  %v1145_v2 = vld [vmem:[%s1468_s1 + $0x70] sm:$0xff]   ;;  %v1147_v4 = vld [vmem:[%s1468_s1 + $0x68] sm:$0xff]   ;;  %s1474_s22 = smov (!%p219_p3, %s957_s22), 31 }
   0xc   : > { %v1144_v1 = vld [vmem:[%s1468_s1 + $0x38] sm:$0xff]   ;;  %1023 = vmatprep.subr.bf16.mxu0 %v1143_v0  ;;  %v1146_v3 = vld [vmem:[%s1468_s1 + $0x30] sm:$0xff]   ;;  %v1148_v5 = vld [vmem:[%s1468_s1 + $0x28] sm:$0xff]   ;;  %s1022_s12 = sshll.u32 %s1474_s22, 3 }
   0xd   : > { %1024 = vmatpush3.bf16.msra.mxu0 %v1144_v1  ;;  %v1149_v6 = vld [vmem:[%s1468_s1 + $0x60] sm:$0xff]   ;;  %v1151_v8 = vld [vmem:[%s1468_s1 + $0x58] sm:$0xff]   ;;  %s1336_s17 = scalar_lea.vmem %s1467_s0, %s1022_s12  ;;  %v1153_v10 = vld [vmem:[%s1468_s1 + $0x50] sm:$0xff]   ;;  %s1438_s9 = scalar_lea.vmem %s1472_s5, %s1022_s12 }
   0xe   : > { %1025 = vmatprep.subr.bf16.mxu0 %v1145_v2  ;;  %v1150_v7 = vld [vmem:[%s1468_s1 + $0x20] sm:$0xff]   ;;  %v1152_v9 = vld [vmem:[%s1468_s1 + $0x18] sm:$0xff]   ;;  %v1154_v12 = vld [vmem:[%s1468_s1 + $0x10] sm:$0xff]  }
   0xf   : > { %v1161_v11 = vld [vmem:[%s1336_s17 + $0x4] ss:$8 sps:$4 sm:$0xff]   ;;  %v1183_v17 = vld [vmem:[%s1470_s3 + $0x38] sm:$0xff]   ;;  %v1159_v18 = vld [vmem:[%s1336_s17] ss:$8 sps:$4 sm:$0xff]  }
  0x10   : > { %495 = vmatprep.mubr.bf16.mxu0 %v1161_v11  ;;  %v1155_v13 = vld [vmem:[%s1468_s1 + $0x48] sm:$0xff]   ;;  %v1157_v15 = vld [vmem:[%s1468_s1 + $0x40] sm:$0xff]   ;;  %v1184_v19 = vld [vmem:[%s1470_s3 + $0x30] sm:$0xff]   ;;  %1103 = vmatprep.subr.bf16.mxu1 %v1183_v17 }
  0x11   : > { %1026 = vmatpush3.bf16.msra.mxu0 %v1146_v3  ;;  %v1156_v14 = vld [vmem:[%s1468_s1 + $0x8] sm:$0xff]   ;;  %v1158_v16 = vld [vmem:[%s1468_s1] sm:$0xff]   ;;  %v1162_v20 = vld [vmem:[%s1336_s17 + $0x14] ss:$8 sps:$4 sm:$0xff]   ;;  %1104 = vmatpush3.bf16.msra.mxu1 %v1183_v17 }
  0x12   : > { %1027 = vmatprep.subr.bf16.mxu0 %v1147_v4  ;;  %1105 = vmatprep.subr.bf16.mxu1 %v1184_v19  ;;  %v1164_v21 = vld [vmem:[%s1336_s17 + $0x10] ss:$8 sps:$4 sm:$0xff]   ;;  %v1165_v22 = vld [vmem:[%s1336_s17 + $0x24] ss:$8 sps:$4 sm:$0xff]   ;;  %v1167_v23 = vld [vmem:[%s1336_s17 + $0x20] ss:$8 sps:$4 sm:$0xff]  }
  0x13   : > { %v1168_v24 = vld [vmem:[%s1336_s17 + $0x34] ss:$8 sps:$4 sm:$0xff]   ;;  %v1170_v25 = vld [vmem:[%s1336_s17 + $0x30] ss:$8 sps:$4 sm:$0xff]   ;;  %v1171_v26 = vld [vmem:[%s1336_s17 + $0x44] ss:$8 sps:$4 sm:$0xff]  }
  0x14   : > { %v1173_v27 = vld [vmem:[%s1336_s17 + $0x40] ss:$8 sps:$4 sm:$0xff]   ;;  %v1174_v28 = vld [vmem:[%s1336_s17 + $0x54] ss:$8 sps:$4 sm:$0xff]   ;;  %v1176_v29 = vld [vmem:[%s1336_s17 + $0x50] ss:$8 sps:$4 sm:$0xff]  }
  0x15   : > { %1028 = vmatpush3.bf16.msra.mxu0 %v1148_v5  ;;  %1106 = vmatpush3.bf16.msra.mxu1 %v1184_v19  ;;  %v1177_v30 = vld [vmem:[%s1336_s17 + $0x64] ss:$8 sps:$4 sm:$0xff]   ;;  %v1179_v31 = vld [vmem:[%s1336_s17 + $0x60] ss:$8 sps:$4 sm:$0xff]   ;;  %v1180_v32 = vld [vmem:[%s1336_s17 + $0x74] ss:$8 sps:$4 sm:$0xff]  }
  0x16   : > { %1029 = vmatprep.subr.bf16.mxu0 %v1149_v6  ;;  %v1182_v33 = vld [vmem:[%s1336_s17 + $0x70] ss:$8 sps:$4 sm:$0xff]   ;;  %v1185_v34 = vld [vmem:[%s1470_s3 + $0x28] sm:$0xff]   ;;  %v1186_v35 = vld [vmem:[%s1470_s3 + $0x20] sm:$0xff]  }
  0x17   : > { %1107 = vmatprep.subr.bf16.mxu1 %v1185_v34  ;;  %v1187_v36 = vld [vmem:[%s1470_s3 + $0x18] sm:$0xff]   ;;  %v1188_v37 = vld [vmem:[%s1470_s3 + $0x10] sm:$0xff]   ;;  %v1189_v38 = vld [vmem:[%s1470_s3 + $0x8] sm:$0xff]  }
  0x18   : > { %v1190_v39 = vld [vmem:[%s1470_s3] sm:$0xff]  }
  0x19   : > { %1030 = vmatpush3.bf16.msra.mxu0 %v1150_v7  ;;  %1108 = vmatpush3.bf16.msra.mxu1 %v1185_v34  ;;  %v1402_v41 = vld [vmem:[%s1469_s2] ss:$0 sm:$0xff] }
  0x1a   : > { %1031 = vmatprep.subr.bf16.mxu0 %v1151_v8  ;;  %1109 = vmatprep.subr.bf16.mxu1 %v1186_v35 }
  0x1d   : > { %1032 = vmatpush3.bf16.msra.mxu0 %v1152_v9  ;;  %1110 = vmatpush3.bf16.msra.mxu1 %v1186_v35 }
  0x1e   : > { %1033 = vmatprep.subr.bf16.mxu0 %v1153_v10  ;;  %1111 = vmatprep.subr.bf16.mxu1 %v1187_v36 }
  0x21   : > { %1034 = vmatpush3.bf16.msra.mxu0 %v1154_v12  ;;  %1112 = vmatpush3.bf16.msra.mxu1 %v1187_v36 }
  0x22   : > { %1035 = vmatprep.subr.bf16.mxu0 %v1155_v13  ;;  %1113 = vmatprep.subr.bf16.mxu1 %v1188_v37 }
  0x25   : > { %1036 = vmatpush3.bf16.msra.mxu0 %v1156_v14  ;;  %1114 = vmatpush3.bf16.msra.mxu1 %v1188_v37 }
  0x26   : > { %1037 = vmatprep.subr.bf16.mxu0 %v1157_v15  ;;  %1115 = vmatprep.subr.bf16.mxu1 %v1189_v38 }
  0x29   : > { %1038 = vmatpush3.bf16.msra.mxu0 %v1158_v16  ;;  %1116 = vmatpush3.bf16.msra.mxu1 %v1189_v38 }
  0x2a   : > { %1117 = vmatprep.subr.bf16.mxu1 %v1190_v39 }
  0x2c   : > { %496 = vmatmul.mubr.bf16.vlgmr.msra.gmra.mxu0 %v1159_v18 }
  0x2d   : > { %503 = vmatprep.mubr.bf16.mxu0 %v1162_v20  ;;  %1118 = vmatpush3.bf16.msra.mxu1 %v1190_v39 }
  0x34   : > { %504 = vmatmul.mubr.bf16.gmra.mxu0 %v1164_v21 }
  0x35   : > { %511 = vmatprep.mubr.bf16.mxu0 %v1165_v22 }
  0x3c   : > { %512 = vmatmul.mubr.bf16.gmra.mxu0 %v1167_v23 }
  0x3d   : > { %519 = vmatprep.mubr.bf16.mxu0 %v1168_v24 }
  0x44   : > { %520 = vmatmul.mubr.bf16.gmra.mxu0 %v1170_v25 }
  0x45   : > { %527 = vmatprep.mubr.bf16.mxu0 %v1171_v26 }
  0x4c   : > { %528 = vmatmul.mubr.bf16.gmra.mxu0 %v1173_v27 }
  0x4d   : > { %535 = vmatprep.mubr.bf16.mxu0 %v1174_v28 }
  0x54   : > { %536 = vmatmul.mubr.bf16.gmra.mxu0 %v1176_v29 }
  0x55   : > { %543 = vmatprep.mubr.bf16.mxu0 %v1177_v30 }
  0x5c   : > { %544 = vmatmul.mubr.bf16.gmra.mxu0 %v1179_v31 }
  0x5d   : > { %551 = vmatprep.mubr.bf16.mxu0 %v1180_v32 }
  0x64   : > { %552 = vmatmul.mubr.bf16.gmra.mxu0 %v1182_v33 }
  0xec   : > { %v1039_v40 = vpop.f32.mrf.mxu0 }
  0xee   : > { %v1040_v42 = vpop.f32.mrf.mxu0 }
  0xef   : > { %v1041_v43 = vadd.f32 %v1040_v42, %v1039_v40 }
  0xf0   : > { %v1042_v44 = vpop.f32.mrf.mxu0 }
  0xf1   : > { %v498_v45 = vadd.f32 %v1041_v43, %v1402_v41 }
  0xf2   : > { %v1043_v46 = vpop.f32.mrf.mxu0 }
  0xf3   : > { %v1044_v47 = vadd.f32 %v1043_v46, %v1042_v44  ;;  %v576_v50 = vmul.f32 0.01, %v498_v45  ;;  %vm560_vm0 = vcmp.gt.f32.partialorder %v498_v45, 0.0 }
  0xf4   : > { %v1045_v48 = vpop.f32.mrf.mxu0 }
  0xf5   : > { %v501_v49 = vadd.f32 %v1044_v47, %v1402_v41  ;;  %v592_v56 = vsel %vm560_vm0, %v498_v45, %v576_v50 }
  0xf6   : > { %v1046_v51 = vpop.f32.mrf.mxu0 }
  0xf7   : > { %v1047_v52 = vadd.f32 %v1046_v51, %v1045_v48  ;;  %vm561_vm1 = vcmp.gt.f32.partialorder %v501_v49, 0.0  ;;  %v577_v53 = vmul.f32 0.01, %v501_v49 }
  0xf8   : > { %v1048_v54 = vpop.f32.mrf.mxu0 }
  0xf9   : > { %v506_v55 = vadd.f32 %v1047_v52, %v1402_v41  ;;  %v593_v57 = vsel %vm561_vm1, %v501_v49, %v577_v53 }
  0xfa   : > { %v1049_v58 = vpop.f32.mrf.mxu0  ;;  %v608_v59 = vpack.c.bf16 %v593_v57, %v592_v56 }
  0xfb   : > { %v1050_v60 = vadd.f32 %v1049_v58, %v1048_v54  ;;  %v578_v62 = vmul.f32 0.01, %v506_v55  ;;  %vm562_vm2 = vcmp.gt.f32.partialorder %v506_v55, 0.0 }
  0xfc   : > { %v1051_v61 = vpop.f32.mrf.mxu0  ;;  %1119 = vmatprep.mubr.bf16.mxu1 %v608_v59 }
  0xfd   : > { %v509_v63 = vadd.f32 %v1050_v60, %v1402_v41  ;;  %v594_v5 = vsel %vm562_vm2, %v506_v55, %v578_v62 }
  0xfe   : > { %v1052_v0 = vpop.f32.mrf.mxu0 }
  0xff   : > { %vm563_vm3 = vcmp.gt.f32.partialorder %v509_v63, 0.0  ;;  %v579_v1 = vmul.f32 0.01, %v509_v63  ;;  %v1053_v2 = vadd.f32 %v1052_v0, %v1051_v61 }
 0x100   : > { %v1054_v3 = vpop.f32.mrf.mxu0 }
 0x101   : > { %v514_v4 = vadd.f32 %v1053_v2, %v1402_v41  ;;  %v595_v6 = vsel %vm563_vm3, %v509_v63, %v579_v1 }
 0x102   : > { %v1055_v7 = vpop.f32.mrf.mxu0  ;;  %v609_v8 = vpack.c.bf16 %v595_v6, %v594_v5 }
 0x103   : > { %v1056_v9 = vadd.f32 %v1055_v7, %v1054_v3  ;;  %v580_v11 = vmul.f32 0.01, %v514_v4  ;;  %vm564_vm4 = vcmp.gt.f32.partialorder %v514_v4, 0.0 }
 0x104   : > { %v1057_v10 = vpop.f32.mrf.mxu0  ;;  %1120 = vmatmul.mubr.bf16.vlgmr.msra.gmra.mxu1 %v609_v8 }
 0x105   : > { %v517_v12 = vadd.f32 %v1056_v9, %v1402_v41  ;;  %v596_v18 = vsel %vm564_vm4, %v514_v4, %v580_v11 }
 0x106   : > { %v1058_v13 = vpop.f32.mrf.mxu0 }
 0x107   : > { %vm565_vm5 = vcmp.gt.f32.partialorder %v517_v12, 0.0  ;;  %v581_v14 = vmul.f32 0.01, %v517_v12  ;;  %v1059_v15 = vadd.f32 %v1058_v13, %v1057_v10 }
 0x108   : > { %v1060_v16 = vpop.f32.mrf.mxu0 }
 0x109   : > { %v522_v17 = vadd.f32 %v1059_v15, %v1402_v41  ;;  %v597_v19 = vsel %vm565_vm5, %v517_v12, %v581_v14 }
 0x10a   : > { %v1061_v20 = vpop.f32.mrf.mxu0  ;;  %v610_v21 = vpack.c.bf16 %v597_v19, %v596_v18  ;;  %v1423_v18 = vld [vmem:[%s1471_s4] ss:$0 sm:$0xff] }
 0x10b   : > { %v1062_v22 = vadd.f32 %v1061_v20, %v1060_v16  ;;  %v582_v24 = vmul.f32 0.01, %v522_v17  ;;  %vm566_vm6 = vcmp.gt.f32.partialorder %v522_v17, 0.0 }
 0x10c   : > { %v1063_v23 = vpop.f32.mrf.mxu0  ;;  %1123 = vmatprep.mubr.bf16.mxu1 %v610_v21 }
 0x10d   : > { %v525_v25 = vadd.f32 %v1062_v22, %v1402_v41  ;;  %v598_v31 = vsel %vm566_vm6, %v522_v17, %v582_v24 }
 0x10e   : > { %v1064_v26 = vpop.f32.mrf.mxu0 }
 0x10f   : > { %vm567_vm7 = vcmp.gt.f32.partialorder %v525_v25, 0.0  ;;  %v583_v27 = vmul.f32 0.01, %v525_v25  ;;  %v1065_v28 = vadd.f32 %v1064_v26, %v1063_v23 }
 0x110   : > { %v1066_v29 = vpop.f32.mrf.mxu0 }
 0x111   : > { %v530_v30 = vadd.f32 %v1065_v28, %v1402_v41  ;;  %v599_v32 = vsel %vm567_vm7, %v525_v25, %v583_v27 }
 0x112   : > { %v1067_v33 = vpop.f32.mrf.mxu0  ;;  %v611_v34 = vpack.c.bf16 %v599_v32, %v598_v31 }
 0x113   : > { %v1068_v35 = vadd.f32 %v1067_v33, %v1066_v29  ;;  %v584_v37 = vmul.f32 0.01, %v530_v30  ;;  %vm568_vm8 = vcmp.gt.f32.partialorder %v530_v30, 0.0 }
 0x114   : > { %v1069_v36 = vpop.f32.mrf.mxu0  ;;  %1124 = vmatmul.mubr.bf16.gmra.mxu1 %v611_v34 }
 0x115   : > { %v533_v38 = vadd.f32 %v1068_v35, %v1402_v41  ;;  %v600_v45 = vsel %vm568_vm8, %v530_v30, %v584_v37 }
 0x116   : > { %v1070_v39 = vpop.f32.mrf.mxu0 }
 0x117   : > { %vm569_vm9 = vcmp.gt.f32.partialorder %v533_v38, 0.0  ;;  %v585_v40 = vmul.f32 0.01, %v533_v38  ;;  %v1071_v42 = vadd.f32 %v1070_v39, %v1069_v36 }
 0x118   : > { %v1072_v43 = vpop.f32.mrf.mxu0 }
 0x119   : > { %v538_v44 = vadd.f32 %v1071_v42, %v1402_v41  ;;  %v601_v46 = vsel %vm569_vm9, %v533_v38, %v585_v40 }
 0x11a   : > { %v1073_v47 = vpop.f32.mrf.mxu0  ;;  %v612_v48 = vpack.c.bf16 %v601_v46, %v600_v45 }
 0x11b   : > { %v1074_v49 = vadd.f32 %v1073_v47, %v1072_v43  ;;  %v586_v51 = vmul.f32 0.01, %v538_v44  ;;  %vm570_vm10 = vcmp.gt.f32.partialorder %v538_v44, 0.0 }
 0x11c   : > { %v1075_v50 = vpop.f32.mrf.mxu0  ;;  %1127 = vmatprep.mubr.bf16.mxu1 %v612_v48 }
 0x11d   : > { %v541_v52 = vadd.f32 %v1074_v49, %v1402_v41  ;;  %v602_v58 = vsel %vm570_vm10, %v538_v44, %v586_v51 }
 0x11e   : > { %v1076_v53 = vpop.f32.mrf.mxu0 }
 0x11f   : > { %vm571_vm11 = vcmp.gt.f32.partialorder %v541_v52, 0.0  ;;  %v587_v54 = vmul.f32 0.01, %v541_v52  ;;  %v1077_v55 = vadd.f32 %v1076_v53, %v1075_v50 }
 0x120   : > { %v1078_v56 = vpop.f32.mrf.mxu0 }
 0x121   : > { %v546_v57 = vadd.f32 %v1077_v55, %v1402_v41  ;;  %v603_v59 = vsel %vm571_vm11, %v541_v52, %v587_v54 }
 0x122   : > { %v1079_v60 = vpop.f32.mrf.mxu0  ;;  %v613_v61 = vpack.c.bf16 %v603_v59, %v602_v58 }
 0x123   : > { %v1080_v62 = vadd.f32 %v1079_v60, %v1078_v56  ;;  %v588_v0 = vmul.f32 0.01, %v546_v57  ;;  %vm572_vm12 = vcmp.gt.f32.partialorder %v546_v57, 0.0 }
 0x124   : > { %v1081_v63 = vpop.f32.mrf.mxu0  ;;  %1128 = vmatmul.mubr.bf16.gmra.mxu1 %v613_v61 }
 0x125   : > { %v549_v1 = vadd.f32 %v1080_v62, %v1402_v41  ;;  %v604_v7 = vsel %vm572_vm12, %v546_v57, %v588_v0 }
 0x126   : > { %v1082_v2 = vpop.f32.mrf.mxu0 }
 0x127   : > { %vm573_vm13 = vcmp.gt.f32.partialorder %v549_v1, 0.0  ;;  %v589_v3 = vmul.f32 0.01, %v549_v1  ;;  %v1083_v4 = vadd.f32 %v1082_v2, %v1081_v63 }
 0x128   : > { %v1084_v5 = vpop.f32.mrf.mxu0 }
 0x129   : > { %v554_v6 = vadd.f32 %v1083_v4, %v1402_v41  ;;  %v605_v8 = vsel %vm573_vm13, %v549_v1, %v589_v3 }
 0x12a   : > { %v1085_v9 = vpop.f32.mrf.mxu0  ;;  %v614_v10 = vpack.c.bf16 %v605_v8, %v604_v7 }
 0x12b   : > { %v1086_v11 = vadd.f32 %v1085_v9, %v1084_v5  ;;  %v590_v12 = vmul.f32 0.01, %v554_v6  ;;  %vm574_vm14 = vcmp.gt.f32.partialorder %v554_v6, 0.0 }
 0x12c   : > { %1131 = vmatprep.mubr.bf16.mxu1 %v614_v10 }
 0x12d   : > { %v557_v13 = vadd.f32 %v1086_v11, %v1402_v41  ;;  %v606_v15 = vsel %vm574_vm14, %v554_v6, %v590_v12 }
 0x12f   : > { %vm575_vm15 = vcmp.gt.f32.partialorder %v557_v13, 0.0  ;;  %v591_v14 = vmul.f32 0.01, %v557_v13 }
 0x131   : > { %v607_v16 = vsel %vm575_vm15, %v557_v13, %v591_v14 }
 0x132   : > { %v615_v17 = vpack.c.bf16 %v607_v16, %v606_v15 }
 0x134   : > { %1132 = vmatmul.mubr.bf16.gmra.mxu1 %v615_v17 }
 0x1c4   : > { %v1121_v19 = vpop.f32.mrf.mxu1 }
 0x1c5   : > { %v730_v20 = vadd.f32 %v1121_v19, %v1423_v18 }
 0x1c6   : > { %v721_v21 = vpop.f32.mrf.mxu1 }
 0x1c7   : > { %v1006_v22 = vmul.f32 -1.442695, %v730_v20  ;;  %v722_v23 = vadd.f32 %v1423_v18, %v721_v21 }
 0x1c8   : > { %v1122_v41 = vpop.f32.mrf.mxu1 }
 0x1c9   : > { %1191 = vpow2.f32 %v1006_v22  ;;  %v1004_v24 = vmul.f32 -1.442695, %v722_v23  ;;  %v733_v25 = vadd.f32 %v1122_v41, %v1423_v18 }
 0x1ca   : > { %v724_v26 = vpop.f32.mrf.mxu1 }
 0x1cb   : > { %1193 = vpow2.f32 %v1004_v24  ;;  %v1007_v27 = vmul.f32 -1.442695, %v733_v25  ;;  %v725_v28 = vadd.f32 %v1423_v18, %v724_v26 }
 0x1cd   : > { %1195 = vpow2.f32 %v1007_v27  ;;  %v1005_v29 = vmul.f32 -1.442695, %v725_v28 }
 0x1cf   : > { %1197 = vpow2.f32 %v1005_v29 }
 0x1d4   : > { %v1125_v30 = vpop.f32.mrf.mxu1 }
 0x1d5   : > { %v746_v31 = vadd.f32 %v1125_v30, %v1423_v18 }
 0x1d6   : > { %v1192_v32 = vpop.eup %1191  ;;  %v737_v33 = vpop.f32.mrf.mxu1 }
 0x1d7   : > { %v834_v34 = vadd.f32 1.0, %v1192_v32  ;;  %v1010_v35 = vmul.f32 -1.442695, %v746_v31  ;;  %v738_v36 = vadd.f32 %v1423_v18, %v737_v33 }
 0x1d8   : > { %v1194_v37 = vpop.eup %1193  ;;  %v1126_v38 = vpop.f32.mrf.mxu1 }
 0x1d9   : > { %1199 = vrcp.f32 %v834_v34  ;;  %v832_v39 = vadd.f32 1.0, %v1194_v37  ;;  %v1008_v40 = vmul.f32 -1.442695, %v738_v36  ;;  %v749_v42 = vadd.f32 %v1126_v38, %v1423_v18 }
 0x1da   : > { %v1196_v43 = vpop.eup %1195  ;;  %1201 = vpow2.f32 %v1010_v35  ;;  %v740_v44 = vpop.f32.mrf.mxu1 }
 0x1db   : > { %1203 = vrcp.f32 %v832_v39  ;;  %v835_v45 = vadd.f32 1.0, %v1196_v43  ;;  %v1011_v46 = vmul.f32 -1.442695, %v749_v42  ;;  %v741_v47 = vadd.f32 %v1423_v18, %v740_v44 }
 0x1dc   : > { %v1198_v48 = vpop.eup %1197  ;;  %1205 = vpow2.f32 %v1008_v40 }
 0x1dd   : > { %1207 = vrcp.f32 %v835_v45  ;;  %v833_v49 = vadd.f32 1.0, %v1198_v48  ;;  %v1009_v50 = vmul.f32 -1.442695, %v741_v47 }
 0x1de   : > { %1209 = vpow2.f32 %v1011_v46 }
 0x1df   : > { %1211 = vrcp.f32 %v833_v49 }
 0x1e0   : > { %1213 = vpow2.f32 %v1009_v50 }
 0x1e4   : > { %v1129_v51 = vpop.f32.mrf.mxu1 }
 0x1e5   : > { %v762_v52 = vadd.f32 %v1129_v51, %v1423_v18 }
 0x1e6   : > { %v1200_v53 = vpop.eup %1199  ;;  %v753_v54 = vpop.f32.mrf.mxu1 }
 0x1e7   : > { %v1202_v55 = vpop.eup %1201  ;;  %882 = vst [vmem:[%s1438_s9 + $0x10] sm:$0xff] %v1200_v53  ;;  %v1014_v56 = vmul.f32 -1.442695, %v762_v52  ;;  %v754_v57 = vadd.f32 %v1423_v18, %v753_v54 }
 0x1e8   : > { %v1204_v58 = vpop.eup %1203  ;;  %v838_v59 = vadd.f32 1.0, %v1202_v55  ;;  %v1130_v60 = vpop.f32.mrf.mxu1 }
 0x1e9   : > { %v1206_v61 = vpop.eup %1205  ;;  %880 = vst [vmem:[%s1438_s9] sm:$0xff] %v1204_v58  ;;  %1215 = vpow2.f32 %v1014_v56  ;;  %v1012_v62 = vmul.f32 -1.442695, %v754_v57  ;;  %v765_v63 = vadd.f32 %v1130_v60, %v1423_v18 }
 0x1ea   : > { %v1208_v0 = vpop.eup %1207  ;;  %1217 = vrcp.f32 %v838_v59  ;;  %v836_v1 = vadd.f32 1.0, %v1206_v61  ;;  %v756_v2 = vpop.f32.mrf.mxu1 }
 0x1eb   : > { %v1210_v3 = vpop.eup %1209  ;;  %883 = vst [vmem:[%s1438_s9 + $0x18] sm:$0xff] %v1208_v0  ;;  %1219 = vpow2.f32 %v1012_v62  ;;  %v1015_v4 = vmul.f32 -1.442695, %v765_v63  ;;  %v757_v5 = vadd.f32 %v1423_v18, %v756_v2 }
 0x1ec   : > { %v1212_v6 = vpop.eup %1211  ;;  %1221 = vrcp.f32 %v836_v1  ;;  %v839_v7 = vadd.f32 1.0, %v1210_v3 }
 0x1ed   : > { %v1214_v8 = vpop.eup %1213  ;;  %881 = vst [vmem:[%s1438_s9 + $0x8] sm:$0xff] %v1212_v6  ;;  %1223 = vpow2.f32 %v1015_v4  ;;  %v1013_v9 = vmul.f32 -1.442695, %v757_v5 }
 0x1ee   : > { %1225 = vrcp.f32 %v839_v7  ;;  %v837_v10 = vadd.f32 1.0, %v1214_v8 }
 0x1ef   : > { %1227 = vpow2.f32 %v1013_v9 }
 0x1f0   : > { %1229 = vrcp.f32 %v837_v10 }
 0x1f4   : > { %v1133_v11 = vpop.f32.mrf.mxu1 }
 0x1f5   : > { %v778_v12 = vadd.f32 %v1133_v11, %v1423_v18 }
 0x1f6   : > { %v1216_v13 = vpop.eup %1215  ;;  %v769_v14 = vpop.f32.mrf.mxu1 }
 0x1f7   : > { %v1218_v15 = vpop.eup %1217  ;;  %v842_v16 = vadd.f32 1.0, %v1216_v13  ;;  %v1018_v17 = vmul.f32 -1.442695, %v778_v12  ;;  %v770_v19 = vadd.f32 %v1423_v18, %v769_v14 }
 0x1f8   : > { %v1220_v20 = vpop.eup %1219  ;;  %886 = vst [vmem:[%s1438_s9 + $0x30] sm:$0xff] %v1218_v15  ;;  %v1134_v21 = vpop.f32.mrf.mxu1 }
 0x1f9   : > { %v1222_v22 = vpop.eup %1221  ;;  %1231 = vrcp.f32 %v842_v16  ;;  %v840_v23 = vadd.f32 1.0, %v1220_v20  ;;  %v1016_v41 = vmul.f32 -1.442695, %v770_v19  ;;  %v781_v24 = vadd.f32 %v1134_v21, %v1423_v18 }
 0x1fa   : > { %v1224_v25 = vpop.eup %1223  ;;  %884 = vst [vmem:[%s1438_s9 + $0x20] sm:$0xff] %v1222_v22  ;;  %1233 = vpow2.f32 %v1018_v17  ;;  %v772_v26 = vpop.f32.mrf.mxu1 }
 0x1fb   : > { %v1226_v27 = vpop.eup %1225  ;;  %1235 = vrcp.f32 %v840_v23  ;;  %v843_v28 = vadd.f32 1.0, %v1224_v25  ;;  %v1019_v29 = vmul.f32 -1.442695, %v781_v24  ;;  %v773_v30 = vadd.f32 %v1423_v18, %v772_v26 }
 0x1fc   : > { %v1228_v31 = vpop.eup %1227  ;;  %887 = vst [vmem:[%s1438_s9 + $0x38] sm:$0xff] %v1226_v27  ;;  %1237 = vpow2.f32 %v1016_v41 }
 0x1fd   : > { %v1230_v32 = vpop.eup %1229  ;;  %1239 = vrcp.f32 %v843_v28  ;;  %v841_v33 = vadd.f32 1.0, %v1228_v31  ;;  %v1017_v34 = vmul.f32 -1.442695, %v773_v30 }
 0x1fe   : > { %885 = vst [vmem:[%s1438_s9 + $0x28] sm:$0xff] %v1230_v32  ;;  %1241 = vpow2.f32 %v1019_v29 }
 0x1ff   : > { %1243 = vrcp.f32 %v841_v33 }
 0x200   : > { %1245 = vpow2.f32 %v1017_v34 }
 0x206   : > { %v1232_v35 = vpop.eup %1231 }
 0x207   : > { %v1234_v36 = vpop.eup %1233  ;;  %890 = vst [vmem:[%s1438_s9 + $0x50] sm:$0xff] %v1232_v35 }
 0x208   : > { %v1236_v37 = vpop.eup %1235  ;;  %v846_v38 = vadd.f32 1.0, %v1234_v36 }
 0x209   : > { %v1238_v18 = vpop.eup %1237  ;;  %888 = vst [vmem:[%s1438_s9 + $0x40] sm:$0xff] %v1236_v37 }
 0x20a   : > { %v1240_v39 = vpop.eup %1239  ;;  %1247 = vrcp.f32 %v846_v38  ;;  %v844_v40 = vadd.f32 1.0, %v1238_v18 }
 0x20b   : > { %v1242_v42 = vpop.eup %1241  ;;  %891 = vst [vmem:[%s1438_s9 + $0x58] sm:$0xff] %v1240_v39 }
 0x20c   : > { %v1244_v43 = vpop.eup %1243  ;;  %1249 = vrcp.f32 %v844_v40  ;;  %v847_v44 = vadd.f32 1.0, %v1242_v42 }
 0x20d   : > { %v1246_v45 = vpop.eup %1245  ;;  %889 = vst [vmem:[%s1438_s9 + $0x48] sm:$0xff] %v1244_v43 }
 0x20e   : > { %1251 = vrcp.f32 %v847_v44  ;;  %v845_v46 = vadd.f32 1.0, %v1246_v45 }
 0x210   : > { %1253 = vrcp.f32 %v845_v46 }
 0x217   : > { %v1248_v47 = vpop.eup %1247 }
 0x218   : > { %894 = vst [vmem:[%s1438_s9 + $0x70] sm:$0xff] %v1248_v47 }
 0x219   : > { %v1250_v48 = vpop.eup %1249 }
 0x21a   : > { %892 = vst [vmem:[%s1438_s9 + $0x60] sm:$0xff] %v1250_v48 }
 0x21b   : > { %v1252_v49 = vpop.eup %1251 }
 0x21c   : > { %895 = vst [vmem:[%s1438_s9 + $0x78] sm:$0xff] %v1252_v49 }
 0x21d   : > { %v1254_v50 = vpop.eup %1253 }
 0x21e   : > { %893 = vst [vmem:[%s1438_s9 + $0x68] sm:$0xff] %v1254_v50 }
 0x21f PF: > { %s15_s18 = sadd.s32 1, %s1261_s18  }
 0x220   : > { %p12_p4 = scmp.ge.s32.totalorder %s15_s18, 4  }
 0x222   :  { %14 = sbr.rel (!%p12_p4) target bundleno = 1 (0x1), region = 70 }

</bundles_post_ra>
